<compile_context>
chip_gen: v7x
topology: tpu7x:2x2x1
jax: 0.10.0
libtpu: 0.0.40
codegen_flags: <defaults>
</compile_context>

<pallas_src>
import functools

import jax
import jax.numpy as jnp
from jax.experimental import pallas as pl
from jax.experimental.pallas import tpu as pltpu


def _round_up(x, m):
    return ((x + m - 1) // m) * m


def encoder_kernel(x_ref, w1_ref, b1_ref, w2_ref, b2_ref, wh_ref, bh_ref,
                   mu_ref, lv_ref, *, latent_dim):
    """One batch tile: 3 MXU matmuls (mu/logvar heads fused) + 2 f32 ReLUs.

    All intermediates stay in VMEM/vregs; outputs are two narrow f32 stores.
    """
    x = x_ref[...]                                              # (TB, in) bf16/f32

    # Layer 1: (TB, in) @ (in, 128) -> f32 accum; bias + ReLU in f32 on the VPU.
    h1 = jnp.dot(x, w1_ref[...], preferred_element_type=jnp.float32)
    h1 = jnp.maximum(h1 + b1_ref[...], 0.0)

    # Layer 2: cast back to the MXU dtype, accumulate in f32.
    h2 = jnp.dot(h1.astype(w2_ref.dtype), w2_ref[...],
                 preferred_element_type=jnp.float32)
    h2 = jnp.maximum(h2 + b2_ref[...], 0.0)

    # Fused mu|logvar head: one (TB, 64) @ (64, 2L) matmul, then split the
    # result into the two narrow outputs (static lane slice, latent_dim small).
    out = jnp.dot(h2.astype(wh_ref.dtype), wh_ref[...],
                  preferred_element_type=jnp.float32) + bh_ref[...]
    mu_ref[...] = out[:, :latent_dim].astype(mu_ref.dtype)
    lv_ref[...] = out[:, latent_dim:2 * latent_dim].astype(lv_ref.dtype)


def prepare_params(params, compute_dtype=jnp.bfloat16):
    """One-time packing (do this OUTSIDE the per-call forward path):
    fuse the mu/logvar head weights/biases and cast matmul operands to the
    compute dtype; biases stay f32 (they are added to the f32 accumulator)."""
    w_head = jnp.concatenate([params["wmu"], params["wlv"]], axis=1)   # (64, 2L)
    b_head = jnp.concatenate([params["bmu"], params["blv"]], axis=1)   # (1, 2L)
    return dict(
        w1=params["w1"].astype(compute_dtype),
        b1=params["b1"].astype(jnp.float32),
        w2=params["w2"].astype(compute_dtype),
        b2=params["b2"].astype(jnp.float32),
        wh=w_head.astype(compute_dtype),
        bh=b_head.astype(jnp.float32),
    )


@functools.partial(jax.jit, static_argnames=("tile_b",))
def encoder_forward(x, prep, *, tile_b=4096):
    """x: (B, input_dim) float32; prep: output of prepare_params().
    Returns (mu, logvar), each (B, latent_dim) float32."""
    B, input_dim = x.shape
    latent_dim = prep["wh"].shape[1] // 2
    compute_dtype = prep["w1"].dtype
    cd_bytes = jnp.dtype(compute_dtype).itemsize

    xc = x.astype(compute_dtype)

    # ---------------- batch tile selection (all static Python) ----------------
    # Multiple of 16 (bf16 sublane packing); as large as the VMEM budget allows.
    tb = min(int(tile_b), _round_up(B, 16))
    tb = max(16, (tb // 16) * 16)

    # Per-row VMEM estimate:
    #   x tile (double-buffered)             : 2 * input_dim * cd_bytes
    #   f32 intermediates h1 / h2 / fused out: 4 * (128 + 64 + 2L)
    #   two f32 outputs (double-buffered)    : 2 * 2 * L * 4
    bytes_per_row = (2 * input_dim * cd_bytes
                     + 4 * (128 + 64 + 2 * latent_dim)
                     + 16 * latent_dim)
    vmem_budget = 12 * 1024 * 1024          # safe vs v5e's 16 MiB scoped default
    max_tb = max(16, (vmem_budget // bytes_per_row) // 16 * 16)
    tb = min(tb, max_tb)

    # Guarantee >= 2 batch tiles when the batch allows it, so both v7x
    # TensorCores get work under dimension_semantics=("parallel",).
    if B >= 32 and _round_up(B, tb) // tb < 2:
        tb = max(16, _round_up((B + 1) // 2, 16))

    b_pad = _round_up(B, tb)
    if b_pad != B:
        xc = jnp.pad(xc, ((0, b_pad - B), (0, 0)))
    grid = (b_pad // tb,)

    # ---------------- advisory cost estimate (kernel is mem-bound) ------------
    flops = 2 * b_pad * (input_dim * 128 + 128 * 64 + 64 * 2 * latent_dim)
    bytes_accessed = (
        b_pad * input_dim * cd_bytes                                   # x read
        + sum(int(v.size) * v.dtype.itemsize for v in prep.values())   # weights
        + 2 * b_pad * latent_dim * 4)                                  # mu+logvar
    cost = pl.CostEstimate(flops=flops, transcendentals=0,
                           bytes_accessed=bytes_accessed)

    kernel = functools.partial(encoder_kernel, latent_dim=latent_dim)
    single = pl.Buffered(1)   # constant-index weights: no double-buffering

    mu, lv = pl.pallas_call(
        kernel,
        out_shape=(jax.ShapeDtypeStruct((b_pad, latent_dim), jnp.float32),
                   jax.ShapeDtypeStruct((b_pad, latent_dim), jnp.float32)),
        grid_spec=pltpu.PrefetchScalarGridSpec(
            num_scalar_prefetch=0,
            grid=grid,
            in_specs=[
                pl.BlockSpec((tb, input_dim), lambda i: (i, 0)),   # x: batch tiled
                pl.BlockSpec(prep["w1"].shape, lambda i: (0, 0), pipeline_mode=single),
                pl.BlockSpec(prep["b1"].shape, lambda i: (0, 0), pipeline_mode=single),
                pl.BlockSpec(prep["w2"].shape, lambda i: (0, 0), pipeline_mode=single),
                pl.BlockSpec(prep["b2"].shape, lambda i: (0, 0), pipeline_mode=single),
                pl.BlockSpec(prep["wh"].shape, lambda i: (0, 0), pipeline_mode=single),
                pl.BlockSpec(prep["bh"].shape, lambda i: (0, 0), pipeline_mode=single),
            ],
            out_specs=[
                pl.BlockSpec((tb, latent_dim), lambda i: (i, 0)),  # mu
                pl.BlockSpec((tb, latent_dim), lambda i: (i, 0)),  # logvar
            ],
        ),
        compiler_params=pltpu.CompilerParams(
            dimension_semantics=("parallel",),   # shard batch tiles across TCs (v7x)
        ),
        cost_estimate=cost,
    )(xc, prep["w1"], prep["b1"], prep["w2"], prep["b2"], prep["wh"], prep["bh"])

    if b_pad != B:
        mu = mu[:B]
        lv = lv[:B]
    return mu, lv


def init_params(key, input_dim, latent_dim):
    """PyTorch nn.Linear default init: U(-1/sqrt(fan_in), +1/sqrt(fan_in))."""
    def linear(key, fan_in, fan_out):
        kw, kb = jax.random.split(key)
        bound = 1.0 / jnp.sqrt(fan_in)
        w = jax.random.uniform(kw, (fan_in, fan_out), jnp.float32, -bound, bound)
        b = jax.random.uniform(kb, (1, fan_out), jnp.float32, -bound, bound)
        return w, b

    k1, k2, k3, k4 = jax.random.split(key, 4)
    w1, b1 = linear(k1, input_dim, 128)
    w2, b2 = linear(k2, 128, 64)
    wmu, bmu = linear(k3, 64, latent_dim)
    wlv, blv = linear(k4, 64, latent_dim)
    return dict(w1=w1, b1=b1, w2=w2, b2=b2, wmu=wmu, bmu=bmu, wlv=wlv, blv=blv)


def encoder_ref(x, p, compute_dtype=jnp.float32):
    """Pure-JAX reference with a matching precision policy (operands in
    compute_dtype, f32 accumulation / bias / ReLU)."""
    cd = compute_dtype
    h = jnp.maximum(
        jnp.dot(x.astype(cd), p["w1"].astype(cd),
                preferred_element_type=jnp.float32) + p["b1"], 0.0)
    h = jnp.maximum(
        jnp.dot(h.astype(cd), p["w2"].astype(cd),
                preferred_element_type=jnp.float32) + p["b2"], 0.0)
    mu = jnp.dot(h.astype(cd), p["wmu"].astype(cd),
                 preferred_element_type=jnp.float32) + p["bmu"]
    lv = jnp.dot(h.astype(cd), p["wlv"].astype(cd),
                 preferred_element_type=jnp.float32) + p["blv"]
    return mu, lv


if __name__ == "__main__":
    key = jax.random.PRNGKey(0)
    k_x, k_p = jax.random.split(key)

    batch, input_dim, latent_dim = 8, 32, 8
    x = jax.random.normal(k_x, (batch, input_dim), jnp.float32)
    params = init_params(k_p, input_dim, latent_dim)

    prep = prepare_params(params)            # one-time packing, outside forward
    mu, logvar = encoder_forward(x, prep)
    jax.block_until_ready((mu, logvar))
    assert mu.shape == (batch, latent_dim) and logvar.shape == (batch, latent_dim)

    # Tight check vs a reference using the same precision policy (bf16 MXU, f32 acc).
    mu_ref, lv_ref = encoder_ref(x, params, compute_dtype=jnp.bfloat16)
    assert jnp.allclose(mu, mu_ref, atol=1e-4, rtol=1e-4)
    assert jnp.allclose(logvar, lv_ref, atol=1e-4, rtol=1e-4)

    # Loose sanity check vs the full-f32 PyTorch-equivalent math.
    mu_f32, lv_f32 = encoder_ref(x, params, compute_dtype=jnp.float32)
    assert jnp.allclose(mu, mu_f32, atol=1e-1, rtol=1e-1)
    assert jnp.allclose(logvar, lv_f32, atol=1e-1, rtol=1e-1)

    print("KERNEL_OK")
</pallas_src>

<mosaic_0001>
module attributes {stable_mosaic.version = 11 : i64} {
  func.func @encoder_kernel(%arg0: i32, %arg1: memref<16x32xbf16, #tpu.memory_space<vmem>>, %arg2: memref<32x128xbf16, #tpu.memory_space<vmem>>, %arg3: memref<1x128xf32, #tpu.memory_space<vmem>>, %arg4: memref<128x64xbf16, #tpu.memory_space<vmem>>, %arg5: memref<1x64xf32, #tpu.memory_space<vmem>>, %arg6: memref<64x16xbf16, #tpu.memory_space<vmem>>, %arg7: memref<1x16xf32, #tpu.memory_space<vmem>>, %arg8: memref<16x8xf32, #tpu.memory_space<vmem>>, %arg9: memref<16x8xf32, #tpu.memory_space<vmem>>) attributes {dimension_semantics = [#tpu.dimension_semantics<parallel>], iteration_bounds = array<i64: 1>, scalar_prefetch = 0 : i64, scratch_operands = 0 : i64, tpu.core_type = #tpu.core_type<tc>, window_params = [{transform_indices = @transform_0, window_bounds = array<i64: 16, 32>}, {pipeline_mode = #tpu.pipeline_mode<synchronous>, transform_indices = @transform_1, window_bounds = array<i64: 32, 128>}, {pipeline_mode = #tpu.pipeline_mode<synchronous>, transform_indices = @transform_2, window_bounds = array<i64: 1, 128>}, {pipeline_mode = #tpu.pipeline_mode<synchronous>, transform_indices = @transform_3, window_bounds = array<i64: 128, 64>}, {pipeline_mode = #tpu.pipeline_mode<synchronous>, transform_indices = @transform_4, window_bounds = array<i64: 1, 64>}, {pipeline_mode = #tpu.pipeline_mode<synchronous>, transform_indices = @transform_5, window_bounds = array<i64: 64, 16>}, {pipeline_mode = #tpu.pipeline_mode<synchronous>, transform_indices = @transform_6, window_bounds = array<i64: 1, 16>}, {transform_indices = @transform_7, window_bounds = array<i64: 16, 8>}, {transform_indices = @transform_8, window_bounds = array<i64: 16, 8>}]} {
    %c0 = arith.constant 0 : index
    %c0_0 = arith.constant 0 : index
    %0 = vector.load %arg1[%c0, %c0_0] : memref<16x32xbf16, #tpu.memory_space<vmem>>, vector<16x32xbf16>
    %c0_1 = arith.constant 0 : index
    %c0_2 = arith.constant 0 : index
    %1 = vector.load %arg2[%c0_1, %c0_2] : memref<32x128xbf16, #tpu.memory_space<vmem>>, vector<32x128xbf16>
    %cst = arith.constant dense<0.000000e+00> : vector<16x128xf32>
    %2 = tpu.matmul %0, %1, %cst {dimension_numbers = #tpu.dot_dimension_numbers<[1], [0], [0], [1], [0, 0, 1, 1], [], []>} : vector<16x32xbf16>, vector<32x128xbf16>, vector<16x128xf32> -> vector<16x128xf32>
    %c0_3 = arith.constant 0 : index
    %c0_4 = arith.constant 0 : index
    %3 = vector.load %arg3[%c0_3, %c0_4] : memref<1x128xf32, #tpu.memory_space<vmem>>, vector<1x128xf32>
    %4 = vector.broadcast %3 : vector<1x128xf32> to vector<16x128xf32>
    %5 = arith.addf %2, %4 : vector<16x128xf32>
    %cst_5 = arith.constant 0.000000e+00 : f32
    %6 = vector.broadcast %cst_5 : f32 to vector<16x128xf32>
    %7 = arith.maximumf %5, %6 : vector<16x128xf32>
    %8 = arith.truncf %7 : vector<16x128xf32> to vector<16x128xbf16>
    %c0_6 = arith.constant 0 : index
    %c0_7 = arith.constant 0 : index
    %9 = vector.load %arg4[%c0_6, %c0_7] : memref<128x64xbf16, #tpu.memory_space<vmem>>, vector<128x64xbf16>
    %cst_8 = arith.constant dense<0.000000e+00> : vector<16x64xf32>
    %10 = tpu.matmul %8, %9, %cst_8 {dimension_numbers = #tpu.dot_dimension_numbers<[1], [0], [0], [1], [0, 0, 1, 1], [], []>} : vector<16x128xbf16>, vector<128x64xbf16>, vector<16x64xf32> -> vector<16x64xf32>
    %c0_9 = arith.constant 0 : index
    %c0_10 = arith.constant 0 : index
    %11 = vector.load %arg5[%c0_9, %c0_10] : memref<1x64xf32, #tpu.memory_space<vmem>>, vector<1x64xf32>
    %12 = vector.broadcast %11 : vector<1x64xf32> to vector<16x64xf32>
    %13 = arith.addf %10, %12 : vector<16x64xf32>
    %cst_11 = arith.constant 0.000000e+00 : f32
    %14 = vector.broadcast %cst_11 : f32 to vector<16x64xf32>
    %15 = arith.maximumf %13, %14 : vector<16x64xf32>
    %16 = arith.truncf %15 : vector<16x64xf32> to vector<16x64xbf16>
    %c0_12 = arith.constant 0 : index
    %c0_13 = arith.constant 0 : index
    %17 = vector.load %arg6[%c0_12, %c0_13] : memref<64x16xbf16, #tpu.memory_space<vmem>>, vector<64x16xbf16>
    %cst_14 = arith.constant dense<0.000000e+00> : vector<16x16xf32>
    %18 = tpu.matmul %16, %17, %cst_14 {dimension_numbers = #tpu.dot_dimension_numbers<[1], [0], [0], [1], [0, 0, 1, 1], [], []>} : vector<16x64xbf16>, vector<64x16xbf16>, vector<16x16xf32> -> vector<16x16xf32>
    %c0_15 = arith.constant 0 : index
    %c0_16 = arith.constant 0 : index
    %19 = vector.load %arg7[%c0_15, %c0_16] : memref<1x16xf32, #tpu.memory_space<vmem>>, vector<1x16xf32>
    %20 = vector.broadcast %19 : vector<1x16xf32> to vector<16x16xf32>
    %21 = arith.addf %18, %20 : vector<16x16xf32>
    %22 = vector.extract_strided_slice %21 {offsets = [0, 0], sizes = [16, 8], strides = [1, 1]} : vector<16x16xf32> to vector<16x8xf32>
    %c0_17 = arith.constant 0 : index
    %c0_18 = arith.constant 0 : index
    %23 = vector.load %arg8[%c0_17, %c0_18] : memref<16x8xf32, #tpu.memory_space<vmem>>, vector<16x8xf32>
    tpu.vector_store %arg8[%c0_17, %c0_18], %22 {strides = array<i32>} : memref<16x8xf32, #tpu.memory_space<vmem>>, vector<16x8xf32>,
    %24 = vector.extract_strided_slice %21 {offsets = [0, 8], sizes = [16, 8], strides = [1, 1]} : vector<16x16xf32> to vector<16x8xf32>
    %c0_19 = arith.constant 0 : index
    %c0_20 = arith.constant 0 : index
    %25 = vector.load %arg9[%c0_19, %c0_20] : memref<16x8xf32, #tpu.memory_space<vmem>>, vector<16x8xf32>
    tpu.vector_store %arg9[%c0_19, %c0_20], %24 {strides = array<i32>} : memref<16x8xf32, #tpu.memory_space<vmem>>, vector<16x8xf32>,
    return
  }
  func.func @transform_0(%arg0: i32) -> (i32, i32) {
    %c0_i32 = arith.constant 0 : i32
    %c0_i32_0 = arith.constant 0 : i32
    return %arg0, %c0_i32 : i32, i32
  }
  func.func @transform_1(%arg0: i32) -> (i32, i32) {
    %c0_i32 = arith.constant 0 : i32
    %c0_i32_0 = arith.constant 0 : i32
    %c0_i32_1 = arith.constant 0 : i32
    return %c0_i32, %c0_i32_0 : i32, i32
  }
  func.func @transform_2(%arg0: i32) -> (i32, i32) {
    %c0_i32 = arith.constant 0 : i32
    %c0_i32_0 = arith.constant 0 : i32
    %c0_i32_1 = arith.constant 0 : i32
    return %c0_i32, %c0_i32_0 : i32, i32
  }
  func.func @transform_3(%arg0: i32) -> (i32, i32) {
    %c0_i32 = arith.constant 0 : i32
    %c0_i32_0 = arith.constant 0 : i32
    %c0_i32_1 = arith.constant 0 : i32
    return %c0_i32, %c0_i32_0 : i32, i32
  }
  func.func @transform_4(%arg0: i32) -> (i32, i32) {
    %c0_i32 = arith.constant 0 : i32
    %c0_i32_0 = arith.constant 0 : i32
    %c0_i32_1 = arith.constant 0 : i32
    return %c0_i32, %c0_i32_0 : i32, i32
  }
  func.func @transform_5(%arg0: i32) -> (i32, i32) {
    %c0_i32 = arith.constant 0 : i32
    %c0_i32_0 = arith.constant 0 : i32
    %c0_i32_1 = arith.constant 0 : i32
    return %c0_i32, %c0_i32_0 : i32, i32
  }
  func.func @transform_6(%arg0: i32) -> (i32, i32) {
    %c0_i32 = arith.constant 0 : i32
    %c0_i32_0 = arith.constant 0 : i32
    %c0_i32_1 = arith.constant 0 : i32
    return %c0_i32, %c0_i32_0 : i32, i32
  }
  func.func @transform_7(%arg0: i32) -> (i32, i32) {
    %c0_i32 = arith.constant 0 : i32
    %c0_i32_0 = arith.constant 0 : i32
    return %arg0, %c0_i32 : i32, i32
  }
  func.func @transform_8(%arg0: i32) -> (i32, i32) {
    %c0_i32 = arith.constant 0 : i32
    %c0_i32_0 = arith.constant 0 : i32
    return %arg0, %c0_i32 : i32, i32
  }
}

</mosaic_0001>

<bundles_post_ra>
// kernel: encoder_forward.1
= control target key start
LH: loop header
LB: loop body
LE: loop exit
PB: predicated region body
PF: predicated region fallthrough
CT: control target
= control target key end

     0   :  { %v422_v0 = vmov 0.0   ;;  %vm423_vm0 = vmmov 0   ;;  %vm59_vm1 = vcmask 261120   ;;  %vm261_vm2 = vcmask 523264   ;;  %s539_s1 = inlined_call_operand.vmem [shape: bf16[32,128], index: 1, kind: input, shape index: {}]   ;;  %s540_s3 = inlined_call_operand.vmem [shape: bf16[128,64], index: 3, kind: input, shape index: {}]   ;;  %s541_s0 = inlined_call_operand.vmem [shape: bf16[16,32], index: 0, kind: input, shape index: {}]   ;;  %s542_s5 = inlined_call_operand.vmem [shape: bf16[64,16], index: 5, kind: input, shape index: {}]   ;;  %s543_s2 = inlined_call_operand.vmem [shape: f32[1,128], index: 2, kind: input, shape index: {}]   ;;  %s544_s4 = inlined_call_operand.vmem [shape: f32[1,64], index: 4, kind: input, shape index: {}]   ;;  %s545_s6 = inlined_call_operand.vmem [shape: f32[1,16], index: 6, kind: input, shape index: {}]   ;;  %s546_s7 = inlined_call_operand.vmem [shape: f32[16,8], index: 7, kind: output, shape index: {0}]   ;;  %s547_s8 = inlined_call_operand.vmem [shape: f32[16,8], index: 8, kind: output, shape index: {1}]  }
   0x1   :  { %364 = vmatprep.subr.bf16.mxu0 %v422_v0  ;;  %v407_v1 = vld [vmem:[%s539_s1] sm:$0xff]   ;;  %368 = vmatprep.mubr.msk.bf16.mxu0 %vm423_vm0, %v422_v0  ;;  %v408_v2 = vld [vmem:[%s539_s1 + $0x8] sm:$0xff]   ;;  %v412_v6 = vld [vmem:[%s540_s3 + $0x10] sm:$0xff]   ;;  %vm306_vm3 = vcmask 64512   ;;  %s424_s1 = smov 120  }
   0x2   :  { %372 = vmatprep.subr.bf16.mxu1 %v422_v0  ;;  %388 = vmatprep.mubr.msk.bf16.mxu1 %vm423_vm0, %v422_v0  ;;  %v410_v3 = vld [vmem:[%s540_s3] sm:$0xff]   ;;  %v411_v5 = vld [vmem:[%s540_s3 + $0x8] sm:$0xff]   ;;  %v413_v7 = vld [vmem:[%s540_s3 + $0x18] sm:$0xff]  }
   0x3   :  { %365 = vmatpush3.bf16.msra.mxu0 %v407_v1  ;;  %v409_v4 = vld [vmem:[%s541_s0] sm:$0xff]   ;;  %373 = vmatpush3.bf16.msra.mxu1 %v410_v3  ;;  %v415_v9 = vld [vmem:[%s540_s3 + $0x28] sm:$0xff]   ;;  %v416_v10 = vld [vmem:[%s540_s3 + $0x30] sm:$0xff]  }
   0x4   :  { %366 = vmatprep.subr.bf16.mxu0 %v422_v0  ;;  %374 = vmatprep.subr.bf16.mxu1 %v422_v0  ;;  %v414_v8 = vld [vmem:[%s540_s3 + $0x20] sm:$0xff]   ;;  %v417_v11 = vld [vmem:[%s540_s3 + $0x38] sm:$0xff]   ;;  %v419_v13 = vld [vmem:[%s542_s5 + $0x8] sm:$0xff]  }
   0x5   :  { %v418_v12 = vld [vmem:[%s542_s5] sm:$0xff]   ;;  %v420_v24 = vld [vmem:[%s542_s5 + $0x10] sm:$0xff]   ;;  %v421_v25 = vld [vmem:[%s542_s5 + $0x18] sm:$0xff]  }
   0x6   :  { %v327_v14 = vld [vmem:[%s543_s2] ss:$0 sm:$0xff] }
   0x7   :  { %367 = vmatpush3.bf16.msra.mxu0 %v408_v2  ;;  %375 = vmatpush3.bf16.msra.mxu1 %v411_v5  ;;  %v332_v26 = vld [vmem:[%s544_s4] ss:$0 sm:$0xff] }
   0x8   :  { %392 = vmatprep.subr.bf16.mxu0 %v422_v0  ;;  %376 = vmatprep.subr.bf16.mxu1 %v422_v0  ;;  %v341_v36 = vld [vmem:[%s545_s6] ss:$0 sm:$0xff] }
   0xa   :  { %369 = vmatmul.mubr.msk.bf16.vlgmr.msra.gmra.mrb[0].mxu0 %vm59_vm1, %v409_v4 }
   0xb   :  { %400 = vmatprep.mubr.msk.bf16.mxu0 %vm423_vm0, %v422_v0  ;;  %377 = vmatpush3.bf16.msra.mxu1 %v412_v6 }
   0xc   :  { %378 = vmatprep.subr.bf16.mxu1 %v422_v0  ;;  %393 = vmatpush3.bf16.msra.mxu0 %v418_v12 }
   0xd   :  { %394 = vmatprep.subr.bf16.mxu0 %v422_v0 }
   0xf   :  { %379 = vmatpush3.bf16.msra.mxu1 %v413_v7 }
  0x10   :  { %380 = vmatprep.subr.bf16.mxu1 %v422_v0  ;;  %395 = vmatpush3.bf16.msra.mxu0 %v419_v13 }
  0x11   :  { %396 = vmatprep.subr.bf16.mxu0 %v422_v0 }
  0x13   :  { %381 = vmatpush3.bf16.msra.mxu1 %v414_v8 }
  0x14   :  { %382 = vmatprep.subr.bf16.mxu1 %v422_v0  ;;  %397 = vmatpush3.bf16.msra.mxu0 %v420_v24 }
  0x15   :  { %398 = vmatprep.subr.bf16.mxu0 %v422_v0 }
  0x17   :  { %383 = vmatpush3.bf16.msra.mxu1 %v415_v9 }
  0x18   :  { %384 = vmatprep.subr.bf16.mxu1 %v422_v0  ;;  %399 = vmatpush3.bf16.msra.mxu0 %v421_v25 }
  0x1b   :  { %385 = vmatpush3.bf16.msra.mxu1 %v416_v10 }
  0x1c   :  { %386 = vmatprep.subr.bf16.mxu1 %v422_v0 }
  0x1f   :  { %387 = vmatpush3.bf16.msra.mxu1 %v417_v11 }
  0xdd   :  { %v97_v15 = vpop.f32.mrb[0].mxu0 }
  0xde   :  { %v98_v16 = vadd.f32 %v327_v14, %v97_v15  ;;  %v370_v17 = vpop.f32.mrb[1].mxu0 }
  0xdf   :  { %v100_v18 = vpop.f32.mrb[2].mxu0 }
  0xe0   :  { %v101_v19 = vadd.f32 %v327_v14, %v100_v18  ;;  %v371_v20 = vpop.f32.mrb[3].mxu0  ;;  %v104_v21 = vmax.f32 %v98_v16, 0.0 }
  0xe2   :  { %v105_v22 = vmax.f32 %v101_v19, 0.0 }
  0xe4   :  { %v106_v23 = vpack.c.bf16 %v105_v22, %v104_v21 }
  0xe6   :  { %389 = vmatmul.mubr.bf16.vlgmr.msra.gmra.mrb[0].mxu1 %v106_v23 }
 0x1b9   :  { %v212_v27 = vpop.f32.mrb[0].mxu1 }
 0x1ba   :  { %v213_v28 = vadd.f32 %v332_v26, %v212_v27  ;;  %v390_v29 = vpop.f32.mrb[1].mxu1 }
 0x1bb   :  { %v215_v30 = vpop.f32.mrb[2].mxu1 }
 0x1bc   :  { %v216_v31 = vadd.f32 %v332_v26, %v215_v30  ;;  %v391_v32 = vpop.f32.mrb[3].mxu1  ;;  %v219_v33 = vmax.f32 %v213_v28, 0.0 }
 0x1be   :  { %v220_v34 = vmax.f32 %v216_v31, 0.0 }
 0x1c0   :  { %v221_v35 = vpack.c.bf16 %v220_v34, %v219_v33 }
 0x1c2   :  { %401 = vmatmul.mubr.msk.bf16.vlgmr.msra.gmra.mrb[4].mxu0 %vm261_vm2, %v221_v35 }
 0x295   :  { %v299_v37 = vpop.f32.mrb[4].mxu0 }
 0x296   :  { %v300_v38 = vadd.f32 %v341_v36, %v299_v37  ;;  %v402_v39 = vpop.f32.mrb[5].mxu0 }
 0x297   :  { %v302_v40 = vpop.f32.mrb[6].mxu0 }
 0x298   :  { %307 = vst.msk [vmem:[%s546_s7] sm:$0xff] %vm306_vm3, %v300_v38  ;;  %v303_v41 = vadd.f32 %v341_v36, %v302_v40  ;;  %311 = vrot.lane.b32.xlu0 %v300_v38, %s424_s1  ;;  %v403_v42 = vpop.f32.mrb[7].mxu0 }
 0x29a   :  { %308 = vst.msk [vmem:[%s546_s7 + $0x8] sm:$0xff] %vm306_vm3, %v303_v41 }
 0x29c   :  { %313 = vrot.lane.b32.xlu0 %v303_v41, %s424_s1 }
 0x30a   :  { %v312_v43 = vpop.permute.xlu0 %311 }
 0x30b   :  { %317 = vst.msk [vmem:[%s547_s8] sm:$0xff] %vm306_vm3, %v312_v43 }
 0x30e   :  { %v314_v44 = vpop.permute.xlu0 %313 }
 0x30f   :  { %318 = vst.msk [vmem:[%s547_s8 + $0x8] sm:$0xff] %vm306_vm3, %v314_v44 }

</bundles_post_ra>
